<compile_context>
chip_gen: v6e
topology: v6e:2x2x1
jax: 0.10.0
libtpu: 0.0.40
codegen_flags: <defaults>
</compile_context>

<pallas_src>
import functools

import jax
import jax.numpy as jnp
from jax.experimental import pallas as pl
from jax.experimental.pallas import tpu as pltpu

SUB = 8  # f32 sublane width


def autoencoder_kernel(x_ref, w1_ref, b1_ref, w2_ref, b2_ref,
                       w3_ref, b3_ref, w4_ref, b4_ref, o_ref):
    cdt = w1_ref.dtype  # compute dtype of the matmul operands (f32 or bf16)
    x = x_ref[...]

    # encoder
    h = jnp.dot(x, w1_ref[...], preferred_element_type=jnp.float32) + b1_ref[...]
    h = jnp.maximum(h, 0.0).astype(cdt)                     # relu
    h = jnp.dot(h, w2_ref[...], preferred_element_type=jnp.float32) + b2_ref[...]
    h = jnp.maximum(h, 0.0).astype(cdt)                     # relu
    # dropout: identity in eval mode

    # decoder
    h = jnp.dot(h, w3_ref[...], preferred_element_type=jnp.float32) + b3_ref[...]
    h = jnp.maximum(h, 0.0).astype(cdt)                     # relu
    out = jnp.dot(h, w4_ref[...], preferred_element_type=jnp.float32) + b4_ref[...]

    o_ref[...] = out.astype(o_ref.dtype)


def autoencoder_forward(x, params, *, block_batch=512, compute_dtype=None):
    """x: (B, input_size). params: (w1, b1, w2, b2, w3, b3, w4, b4).

    Weights are (in_features, out_features); biases are (1, out_features).
    """
    w1, b1, w2, b2, w3, b3, w4, b4 = params
    B, F = x.shape
    H1 = w1.shape[1]   # 64
    H2 = w2.shape[1]   # 32
    out_dtype = x.dtype
    cdt = jnp.dtype(compute_dtype) if compute_dtype is not None else jnp.dtype(x.dtype)
    c_item = cdt.itemsize
    o_item = jnp.dtype(out_dtype).itemsize

    # ---- batch tiling (sublane-aligned, VMEM-budgeted) ----------------------
    TB = max(SUB, min(int(block_batch), pl.cdiv(B, SUB) * SUB))
    TB = pl.cdiv(TB, SUB) * SUB

    weight_bytes = ((F * H1 + H1 * H2 + H2 * H1 + H1 * F) * c_item
                    + (H1 + H2 + H1 + F) * 4)

    def tile_bytes(tb):  # double-buffered x tile + double-buffered out tile
        return 2 * tb * F * c_item + 2 * tb * F * o_item

    budget = 40 << 20
    while TB > SUB and tile_bytes(TB) + 2 * weight_bytes > budget:
        TB = max(SUB, (TB // 2 // SUB) * SUB)

    Bp = pl.cdiv(B, TB) * TB
    xc = x.astype(cdt)
    if Bp != B:
        xc = jnp.pad(xc, ((0, Bp - B), (0, 0)))

    grid = (Bp // TB,)

    # x / out streamed in lane-natural width; weights/biases VMEM-resident.
    x_spec = pl.BlockSpec((TB, F), lambda i: (i, 0))
    out_spec = pl.BlockSpec((TB, F), lambda i: (i, 0))

    def resident(shape):  # same block every grid step -> stays in VMEM
        return pl.BlockSpec(shape, lambda i: (0, 0))

    w1c = w1.astype(cdt)
    w2c = w2.astype(cdt)
    w3c = w3.astype(cdt)
    w4c = w4.astype(cdt)
    b1c = b1.astype(jnp.float32)
    b2c = b2.astype(jnp.float32)
    b3c = b3.astype(jnp.float32)
    b4c = b4.astype(jnp.float32)

    in_specs = [
        x_spec,
        resident((F, H1)), resident((1, H1)),
        resident((H1, H2)), resident((1, H2)),
        resident((H2, H1)), resident((1, H1)),
        resident((H1, F)), resident((1, F)),
    ]

    # ---- VMEM budget + headroom ---------------------------------------------
    vmem_bytes = tile_bytes(TB) + 2 * weight_bytes + (2 << 20)
    vmem_bytes = int(min(max(vmem_bytes, 4 << 20), 64 << 20))

    # ---- advisory cost estimate ----------------------------------------------
    flops = 2 * Bp * (F * H1 + H1 * H2 + H2 * H1 + H1 * F)
    bytes_accessed = Bp * F * c_item + Bp * F * o_item + weight_bytes

    out = pl.pallas_call(
        autoencoder_kernel,
        out_shape=jax.ShapeDtypeStruct((Bp, F), out_dtype),
        grid=grid,
        in_specs=in_specs,
        out_specs=out_spec,
        compiler_params=pltpu.CompilerParams(
            dimension_semantics=("parallel",),
            vmem_limit_bytes=vmem_bytes,
        ),
        cost_estimate=pl.CostEstimate(
            flops=int(flops), transcendentals=0,
            bytes_accessed=int(bytes_accessed)),
    )(xc, w1c, b1c, w2c, b2c, w3c, b3c, w4c, b4c)

    if Bp != B:
        out = out[:B]
    return out


def init_params(key, input_size):
    """Deterministic init mimicking nn.Linear shapes.

    PyTorch Linear weight is (out, in); we store the transpose (in, out) so the
    kernel can do x @ W + b.  Biases are (1, out) for TPU lane layout.
    """
    def linear(key, fan_in, fan_out):
        kw, kb = jax.random.split(key)
        bound = 1.0 / jnp.sqrt(fan_in)
        w = jax.random.uniform(kw, (fan_in, fan_out), jnp.float32, -bound, bound)
        b = jax.random.uniform(kb, (1, fan_out), jnp.float32, -bound, bound)
        return w, b

    k1, k2, k3, k4 = jax.random.split(key, 4)
    w1, b1 = linear(k1, input_size, 64)   # encode_w1
    w2, b2 = linear(k2, 64, 32)           # encode_w2
    w3, b3 = linear(k3, 32, 64)           # decode_w1
    w4, b4 = linear(k4, 64, input_size)   # decode_w2
    return (w1, b1, w2, b2, w3, b3, w4, b4)


def reference_forward(x, params):
    w1, b1, w2, b2, w3, b3, w4, b4 = params
    h = jnp.maximum(x @ w1 + b1, 0.0)
    h = jnp.maximum(h @ w2 + b2, 0.0)
    h = jnp.maximum(h @ w3 + b3, 0.0)
    return h @ w4 + b4


if __name__ == "__main__":
    key = jax.random.PRNGKey(0)
    kx, kp = jax.random.split(key)

    batch = 8
    input_size = 16
    x = jax.random.normal(kx, (batch, input_size), dtype=jnp.float32)
    params = init_params(kp, input_size)

    fwd = jax.jit(functools.partial(autoencoder_forward, block_batch=512))
    out = jax.block_until_ready(fwd(x, params))

    ref = reference_forward(x, params)
    assert out.shape == (batch, input_size)
    assert jnp.allclose(out, ref, atol=1e-5, rtol=1e-5)

    print("KERNEL_OK")
</pallas_src>

<mosaic_0001>
module attributes {stable_mosaic.version = 11 : i64} {
  func.func @autoencoder_kernel(%arg0: i32, %arg1: memref<8x16xf32, #tpu.memory_space<vmem>>, %arg2: memref<16x64xf32, #tpu.memory_space<vmem>>, %arg3: memref<1x64xf32, #tpu.memory_space<vmem>>, %arg4: memref<64x32xf32, #tpu.memory_space<vmem>>, %arg5: memref<1x32xf32, #tpu.memory_space<vmem>>, %arg6: memref<32x64xf32, #tpu.memory_space<vmem>>, %arg7: memref<1x64xf32, #tpu.memory_space<vmem>>, %arg8: memref<64x16xf32, #tpu.memory_space<vmem>>, %arg9: memref<1x16xf32, #tpu.memory_space<vmem>>, %arg10: memref<8x16xf32, #tpu.memory_space<vmem>>) attributes {dimension_semantics = [#tpu.dimension_semantics<parallel>], iteration_bounds = array<i64: 1>, scalar_prefetch = 0 : i64, scratch_operands = 0 : i64, tpu.core_type = #tpu.core_type<tc>, window_params = [{transform_indices = @transform_0, window_bounds = array<i64: 8, 16>}, {pipeline_mode = #tpu.pipeline_mode<synchronous>, transform_indices = @transform_1, window_bounds = array<i64: 16, 64>}, {pipeline_mode = #tpu.pipeline_mode<synchronous>, transform_indices = @transform_2, window_bounds = array<i64: 1, 64>}, {pipeline_mode = #tpu.pipeline_mode<synchronous>, transform_indices = @transform_3, window_bounds = array<i64: 64, 32>}, {pipeline_mode = #tpu.pipeline_mode<synchronous>, transform_indices = @transform_4, window_bounds = array<i64: 1, 32>}, {pipeline_mode = #tpu.pipeline_mode<synchronous>, transform_indices = @transform_5, window_bounds = array<i64: 32, 64>}, {pipeline_mode = #tpu.pipeline_mode<synchronous>, transform_indices = @transform_6, window_bounds = array<i64: 1, 64>}, {pipeline_mode = #tpu.pipeline_mode<synchronous>, transform_indices = @transform_7, window_bounds = array<i64: 64, 16>}, {pipeline_mode = #tpu.pipeline_mode<synchronous>, transform_indices = @transform_8, window_bounds = array<i64: 1, 16>}, {transform_indices = @transform_9, window_bounds = array<i64: 8, 16>}]} {
    %c0 = arith.constant 0 : index
    %c0_0 = arith.constant 0 : index
    %0 = vector.load %arg1[%c0, %c0_0] : memref<8x16xf32, #tpu.memory_space<vmem>>, vector<8x16xf32>
    %c0_1 = arith.constant 0 : index
    %c0_2 = arith.constant 0 : index
    %1 = vector.load %arg2[%c0_1, %c0_2] : memref<16x64xf32, #tpu.memory_space<vmem>>, vector<16x64xf32>
    %cst = arith.constant dense<0.000000e+00> : vector<8x64xf32>
    %2 = tpu.matmul %0, %1, %cst {dimension_numbers = #tpu.dot_dimension_numbers<[1], [0], [0], [1], [0, 0, 1, 1], [], []>} : vector<8x16xf32>, vector<16x64xf32>, vector<8x64xf32> -> vector<8x64xf32>
    %c0_3 = arith.constant 0 : index
    %c0_4 = arith.constant 0 : index
    %3 = vector.load %arg3[%c0_3, %c0_4] : memref<1x64xf32, #tpu.memory_space<vmem>>, vector<1x64xf32>
    %4 = vector.broadcast %3 : vector<1x64xf32> to vector<8x64xf32>
    %5 = arith.addf %2, %4 : vector<8x64xf32>
    %cst_5 = arith.constant 0.000000e+00 : f32
    %6 = vector.broadcast %cst_5 : f32 to vector<8x64xf32>
    %7 = arith.maximumf %5, %6 : vector<8x64xf32>
    %c0_6 = arith.constant 0 : index
    %c0_7 = arith.constant 0 : index
    %8 = vector.load %arg4[%c0_6, %c0_7] : memref<64x32xf32, #tpu.memory_space<vmem>>, vector<64x32xf32>
    %cst_8 = arith.constant dense<0.000000e+00> : vector<8x32xf32>
    %9 = tpu.matmul %7, %8, %cst_8 {dimension_numbers = #tpu.dot_dimension_numbers<[1], [0], [0], [1], [0, 0, 1, 1], [], []>} : vector<8x64xf32>, vector<64x32xf32>, vector<8x32xf32> -> vector<8x32xf32>
    %c0_9 = arith.constant 0 : index
    %c0_10 = arith.constant 0 : index
    %10 = vector.load %arg5[%c0_9, %c0_10] : memref<1x32xf32, #tpu.memory_space<vmem>>, vector<1x32xf32>
    %11 = vector.broadcast %10 : vector<1x32xf32> to vector<8x32xf32>
    %12 = arith.addf %9, %11 : vector<8x32xf32>
    %cst_11 = arith.constant 0.000000e+00 : f32
    %13 = vector.broadcast %cst_11 : f32 to vector<8x32xf32>
    %14 = arith.maximumf %12, %13 : vector<8x32xf32>
    %c0_12 = arith.constant 0 : index
    %c0_13 = arith.constant 0 : index
    %15 = vector.load %arg6[%c0_12, %c0_13] : memref<32x64xf32, #tpu.memory_space<vmem>>, vector<32x64xf32>
    %cst_14 = arith.constant dense<0.000000e+00> : vector<8x64xf32>
    %16 = tpu.matmul %14, %15, %cst_14 {dimension_numbers = #tpu.dot_dimension_numbers<[1], [0], [0], [1], [0, 0, 1, 1], [], []>} : vector<8x32xf32>, vector<32x64xf32>, vector<8x64xf32> -> vector<8x64xf32>
    %c0_15 = arith.constant 0 : index
    %c0_16 = arith.constant 0 : index
    %17 = vector.load %arg7[%c0_15, %c0_16] : memref<1x64xf32, #tpu.memory_space<vmem>>, vector<1x64xf32>
    %18 = vector.broadcast %17 : vector<1x64xf32> to vector<8x64xf32>
    %19 = arith.addf %16, %18 : vector<8x64xf32>
    %cst_17 = arith.constant 0.000000e+00 : f32
    %20 = vector.broadcast %cst_17 : f32 to vector<8x64xf32>
    %21 = arith.maximumf %19, %20 : vector<8x64xf32>
    %c0_18 = arith.constant 0 : index
    %c0_19 = arith.constant 0 : index
    %22 = vector.load %arg8[%c0_18, %c0_19] : memref<64x16xf32, #tpu.memory_space<vmem>>, vector<64x16xf32>
    %cst_20 = arith.constant dense<0.000000e+00> : vector<8x16xf32>
    %23 = tpu.matmul %21, %22, %cst_20 {dimension_numbers = #tpu.dot_dimension_numbers<[1], [0], [0], [1], [0, 0, 1, 1], [], []>} : vector<8x64xf32>, vector<64x16xf32>, vector<8x16xf32> -> vector<8x16xf32>
    %c0_21 = arith.constant 0 : index
    %c0_22 = arith.constant 0 : index
    %24 = vector.load %arg9[%c0_21, %c0_22] : memref<1x16xf32, #tpu.memory_space<vmem>>, vector<1x16xf32>
    %25 = vector.broadcast %24 : vector<1x16xf32> to vector<8x16xf32>
    %26 = arith.addf %23, %25 : vector<8x16xf32>
    %c0_23 = arith.constant 0 : index
    %c0_24 = arith.constant 0 : index
    %27 = vector.load %arg10[%c0_23, %c0_24] : memref<8x16xf32, #tpu.memory_space<vmem>>, vector<8x16xf32>
    tpu.vector_store %arg10[%c0_23, %c0_24], %26 {strides = array<i32>} : memref<8x16xf32, #tpu.memory_space<vmem>>, vector<8x16xf32>,
    return
  }
  func.func @transform_0(%arg0: i32) -> (i32, i32) {
    %c0_i32 = arith.constant 0 : i32
    %c0_i32_0 = arith.constant 0 : i32
    return %arg0, %c0_i32 : i32, i32
  }
  func.func @transform_1(%arg0: i32) -> (i32, i32) {
    %c0_i32 = arith.constant 0 : i32
    %c0_i32_0 = arith.constant 0 : i32
    %c0_i32_1 = arith.constant 0 : i32
    return %c0_i32, %c0_i32_0 : i32, i32
  }
  func.func @transform_2(%arg0: i32) -> (i32, i32) {
    %c0_i32 = arith.constant 0 : i32
    %c0_i32_0 = arith.constant 0 : i32
    %c0_i32_1 = arith.constant 0 : i32
    return %c0_i32, %c0_i32_0 : i32, i32
  }
  func.func @transform_3(%arg0: i32) -> (i32, i32) {
    %c0_i32 = arith.constant 0 : i32
    %c0_i32_0 = arith.constant 0 : i32
    %c0_i32_1 = arith.constant 0 : i32
    return %c0_i32, %c0_i32_0 : i32, i32
  }
  func.func @transform_4(%arg0: i32) -> (i32, i32) {
    %c0_i32 = arith.constant 0 : i32
    %c0_i32_0 = arith.constant 0 : i32
    %c0_i32_1 = arith.constant 0 : i32
    return %c0_i32, %c0_i32_0 : i32, i32
  }
  func.func @transform_5(%arg0: i32) -> (i32, i32) {
    %c0_i32 = arith.constant 0 : i32
    %c0_i32_0 = arith.constant 0 : i32
    %c0_i32_1 = arith.constant 0 : i32
    return %c0_i32, %c0_i32_0 : i32, i32
  }
  func.func @transform_6(%arg0: i32) -> (i32, i32) {
    %c0_i32 = arith.constant 0 : i32
    %c0_i32_0 = arith.constant 0 : i32
    %c0_i32_1 = arith.constant 0 : i32
    return %c0_i32, %c0_i32_0 : i32, i32
  }
  func.func @transform_7(%arg0: i32) -> (i32, i32) {
    %c0_i32 = arith.constant 0 : i32
    %c0_i32_0 = arith.constant 0 : i32
    %c0_i32_1 = arith.constant 0 : i32
    return %c0_i32, %c0_i32_0 : i32, i32
  }
  func.func @transform_8(%arg0: i32) -> (i32, i32) {
    %c0_i32 = arith.constant 0 : i32
    %c0_i32_0 = arith.constant 0 : i32
    %c0_i32_1 = arith.constant 0 : i32
    return %c0_i32, %c0_i32_0 : i32, i32
  }
  func.func @transform_9(%arg0: i32) -> (i32, i32) {
    %c0_i32 = arith.constant 0 : i32
    %c0_i32_0 = arith.constant 0 : i32
    return %arg0, %c0_i32 : i32, i32
  }
}

</mosaic_0001>

<bundles_post_ra>
// kernel: autoencoder_forward.1
= control target key start
LH: loop header
LB: loop body
LE: loop exit
PB: predicated region body
PF: predicated region fallthrough
CT: control target
= control target key end

     0   :  { %v512_v1 = vmov 0.0   ;;  %vm513_vm0 = vmmov 0   ;;  %vm43_vm1 = vcmask 130048   ;;  %s683_s0 = inlined_call_operand.vmem [shape: f32[8,16], index: 0, kind: input, shape index: {}]   ;;  %s684_s1 = inlined_call_operand.vmem [shape: f32[16,64], index: 1, kind: input, shape index: {}]   ;;  %s685_s2 = inlined_call_operand.vmem [shape: f32[1,64], index: 2, kind: input, shape index: {}]   ;;  %s686_s3 = inlined_call_operand.vmem [shape: f32[64,32], index: 3, kind: input, shape index: {}]   ;;  %s687_s4 = inlined_call_operand.vmem [shape: f32[1,32], index: 4, kind: input, shape index: {}]   ;;  %s688_s5 = inlined_call_operand.vmem [shape: f32[32,64], index: 5, kind: input, shape index: {}]   ;;  %s689_s6 = inlined_call_operand.vmem [shape: f32[1,64], index: 6, kind: input, shape index: {}]   ;;  %s690_s7 = inlined_call_operand.vmem [shape: f32[64,16], index: 7, kind: input, shape index: {}]   ;;  %s691_s8 = inlined_call_operand.vmem [shape: f32[1,16], index: 8, kind: input, shape index: {}]   ;;  %s692_s9 = inlined_call_operand.hbm [shape: f32[8,16], index: 9, kind: output, shape index: {}]  }
   0x1   :  { %v35_v0 = vld [vmem:[%s684_s1 + $0x8] sm:$0xff]  ;;  %431 = vmatprep.subr.mxu1 %v512_v1  ;;  %v34_v2 = vld [vmem:[%s684_s1] sm:$0xff]  ;;  %435 = vmatprep.mubr.msk.f32.mxu1 %vm513_vm0, %v512_v1  ;;  %v125_v4 = vld [vmem:[%s686_s3 + $0x38] sm:$0xff] }
   0x2   :  { %432 = vmatpush3.msra.mxu1 %v35_v0  ;;  %v33_v3 = vld [vmem:[%s683_s0] sm:$0xff]  ;;  %457 = vmatprep.subr.mxu0 %v512_v1 }
   0x3   :  { %433 = vmatprep.subr.mxu1 %v512_v1  ;;  %465 = vmatprep.mubr.msk.f32.mxu0 %vm513_vm0, %v512_v1 }
   0x4   :  { %14 = vsyncpa [#allocation3], 0  ;;  %434 = vmatpush3.msra.mxu1 %v34_v2  ;;  %v124_v5 = vld [vmem:[%s686_s3 + $0x30] sm:$0xff]  ;;  %v123_v6 = vld [vmem:[%s686_s3 + $0x28] sm:$0xff]  ;;  %vm133_vm2 = vcmask 523264   ;;  %vm219_vm3 = vcmask 261120  }
   0x5   :  { %436 = vmatmul.mubr.msk.f32.vlgmr.msra.gmra.mxu1 %vm43_vm1, %v33_v3  ;;  %438 = vmatprep.subr.mxu1 %v512_v1  ;;  %v122_v7 = vld [vmem:[%s686_s3 + $0x20] sm:$0xff]  ;;  %v121_v8 = vld [vmem:[%s686_s3 + $0x18] sm:$0xff]  ;;  %v120_v9 = vld [vmem:[%s686_s3 + $0x10] sm:$0xff]  ;;  %s514_s12 = smov [#allocation2]  }
   0x6   :  { %439 = vmatpush3.msra.mxu1 %v125_v4  ;;  %454 = vmatprep.mubr.msk.f32.mxu1 %vm513_vm0, %v512_v1  ;;  %v119_v10 = vld [vmem:[%s686_s3 + $0x8] sm:$0xff]  ;;  %v118_v11 = vld [vmem:[%s686_s3] sm:$0xff]  ;;  %v211_v12 = vld [vmem:[%s688_s5 + $0x18] sm:$0xff]  ;;  %s389_s13 = sshll.u32 %s514_s12, 4  ;;  %s390_s13 = int_to_ptr.vmem [resolvable:$true] %s389_s13 }
   0x7   :  { %440 = vmatprep.subr.mxu1 %v512_v1  ;;  %458 = vmatpush3.msra.mxu0 %v211_v12  ;;  %v397_v13 = vld [vmem:[%s685_s2] ss:$0 sm:$0xff]  ;;  %v210_v18 = vld [vmem:[%s688_s5 + $0x10] sm:$0xff]  ;;  %v209_v19 = vld [vmem:[%s688_s5 + $0x8] sm:$0xff]  ;;  %p495_p1 = scmp.lt.s32.totalorder %s390_s13, %s390_s13 }
   0x8   :  { %441 = vmatpush3.msra.mxu1 %v124_v5  ;;  %459 = vmatprep.subr.mxu0 %v512_v1  ;;  %v208_v20 = vld [vmem:[%s688_s5] sm:$0xff]  ;;  %v301_v26 = vld [vmem:[%s690_s7 + $0x38] sm:$0xff]  ;;  %v300_v27 = vld [vmem:[%s690_s7 + $0x30] sm:$0xff] }
   0x9   :  { %442 = vmatprep.subr.mxu1 %v512_v1  ;;  %460 = vmatpush3.msra.mxu0 %v210_v18  ;;  %v399_v21 = vld [vmem:[%s687_s4] ss:$0 sm:$0xff]  ;;  %v299_v28 = vld [vmem:[%s690_s7 + $0x28] sm:$0xff]  ;;  %v297_v30 = vld [vmem:[%s690_s7 + $0x18] sm:$0xff] }
   0xa   :  { %443 = vmatpush3.msra.mxu1 %v123_v6  ;;  %461 = vmatprep.subr.mxu0 %v512_v1  ;;  %v298_v29 = vld [vmem:[%s690_s7 + $0x20] sm:$0xff]  ;;  %v296_v31 = vld [vmem:[%s690_s7 + $0x10] sm:$0xff]  ;;  %v295_v32 = vld [vmem:[%s690_s7 + $0x8] sm:$0xff] }
   0xb   :  { %444 = vmatprep.subr.mxu1 %v512_v1  ;;  %462 = vmatpush3.msra.mxu0 %v209_v19  ;;  %v294_v33 = vld [vmem:[%s690_s7] sm:$0xff]  ;;  %s490_s7 = scalar_lea.vmem %s390_s13, 128 }
   0xc   :  { %445 = vmatpush3.msra.mxu1 %v122_v7  ;;  %463 = vmatprep.subr.mxu0 %v512_v1  ;;  %v401_v34 = vld [vmem:[%s689_s6] ss:$0 sm:$0xff]  ;;  %p491_p0 = scmp.ne.s32.totalorder %s390_s13, %s490_s7  ;;  %p496_p2 = scmp.lt.s32.totalorder %s490_s7, %s490_s7 }
   0xd   :  { %446 = vmatprep.subr.mxu1 %v512_v1  ;;  %464 = vmatpush3.msra.mxu0 %v208_v20  ;;  %v403_v39 = vld [vmem:[%s691_s8] ss:$0 sm:$0xff] }
   0xe   :  { %447 = vmatpush3.msra.mxu1 %v121_v8  ;;  %468 = vmatprep.subr.mxu0 %v512_v1  ;;  %p497_p3 = por %p496_p2, %p495_p1 }
   0xf   :  { %448 = vmatprep.subr.mxu1 %v512_v1 }
  0x10   :  { %449 = vmatpush3.msra.mxu1 %v120_v9  ;;  %p498_p4 = pnand %p497_p3, %p491_p0 }
  0x11   :  { %450 = vmatprep.subr.mxu1 %v512_v1 }
  0x12   :  { %451 = vmatpush3.msra.mxu1 %v119_v10 }
  0x13   :  { %452 = vmatprep.subr.mxu1 %v512_v1 }
  0x14   :  { %453 = vmatpush3.msra.mxu1 %v118_v11 }
  0xc5   :  { %v113_v14 = vpop.f32.mrf.mxu1 }
  0xc6   :  { %v114_v15 = vadd.f32 %v397_v13, %v113_v14 }
  0xc7   :  { %v437_v16 = vpop.f32.mrf.mxu1 }
  0xc8   :  { %v117_v17 = vmax.f32 %v114_v15, 0.0 }
  0xca   :  { %455 = vmatmul.mubr.msk.f32.vlgmr.msra.gmra.mxu1 %vm133_vm2, %v117_v17 }
 0x18a   :  { %v203_v22 = vpop.f32.mrf.mxu1 }
 0x18b   :  { %v204_v23 = vadd.f32 %v399_v21, %v203_v22 }
 0x18c   :  { %v456_v24 = vpop.f32.mrf.mxu1 }
 0x18d   :  { %v207_v25 = vmax.f32 %v204_v23, 0.0 }
 0x18f   :  { %466 = vmatmul.mubr.msk.f32.vlgmr.msra.gmra.mxu0 %vm219_vm3, %v207_v25 }
 0x190   :  { %469 = vmatpush3.msra.mxu0 %v301_v26  ;;  %484 = vmatprep.mubr.msk.f32.mxu0 %vm513_vm0, %v512_v1 }
 0x191   :  { %470 = vmatprep.subr.mxu0 %v512_v1 }
 0x192   :  { %471 = vmatpush3.msra.mxu0 %v300_v27 }
 0x193   :  { %472 = vmatprep.subr.mxu0 %v512_v1 }
 0x194   :  { %473 = vmatpush3.msra.mxu0 %v299_v28 }
 0x195   :  { %474 = vmatprep.subr.mxu0 %v512_v1 }
 0x196   :  { %475 = vmatpush3.msra.mxu0 %v298_v29 }
 0x197   :  { %476 = vmatprep.subr.mxu0 %v512_v1 }
 0x198   :  { %477 = vmatpush3.msra.mxu0 %v297_v30 }
 0x199   :  { %478 = vmatprep.subr.mxu0 %v512_v1 }
 0x19a   :  { %479 = vmatpush3.msra.mxu0 %v296_v31 }
 0x19b   :  { %480 = vmatprep.subr.mxu0 %v512_v1 }
 0x19c   :  { %481 = vmatpush3.msra.mxu0 %v295_v32 }
 0x19d   :  { %482 = vmatprep.subr.mxu0 %v512_v1 }
 0x19e   :  { %483 = vmatpush3.msra.mxu0 %v294_v33 }
 0x24f   :  { %v289_v35 = vpop.f32.mrf.mxu0 }
 0x250   :  { %v290_v36 = vadd.f32 %v401_v34, %v289_v35 }
 0x251   :  { %v467_v37 = vpop.f32.mrf.mxu0 }
 0x252   :  { %v293_v38 = vmax.f32 %v290_v36, 0.0 }
 0x254   :  { %485 = vmatmul.mubr.msk.f32.vlgmr.msra.gmra.mxu0 %vm133_vm2, %v293_v38 }
 0x314   :  { %v378_v40 = vpop.f32.mrf.mxu0 }
 0x315   :  { %v379_v41 = vadd.f32 %v403_v39, %v378_v40 }
 0x316   :  { %v486_v42 = vpop.f32.mrf.mxu0 }
 0x317   :  { %382 = vst.msk [vmem:[#allocation2] sm:$0xff] %vm43_vm1, %v379_v41 }
 0x318   :  { %501 = shalt.err (!%p498_p4)
}
 0x319   :  { %392 = dma.vmem_to_hbm [thread:$0]  %s390_s13, 128, %s692_s9, [#allocation3]  }
 0x31a   :  { %510 = dma.done.wait [#allocation3], 128  }
 0x31b   :  { %511 = vsyncadd [#allocation3], 4294967168 }
 0x31c   :  { %396 = vsyncpa [#allocation3], 1 }

</bundles_post_ra>
